<compile_context>
chip_gen: v7x
topology: tpu7x:2x2x1
jax: 0.10.0
libtpu: 0.0.40
codegen_flags: <defaults>
</compile_context>

<pallas_src>
import functools
import math

import jax
import jax.numpy as jnp
from jax.experimental import pallas as pl
from jax.experimental.pallas import tpu as pltpu


# ------------------------------- constants ----------------------------------

LANE = 128                      # feature dims padded to this
TM_CAP = 1024                   # max output row-block (nodes)
TK_CAP = 1024                   # max reduction block over nodes (adj K)
TS_CAP = 512                    # max row-block for the support (h @ W) kernel
SUPPORT_RESIDENT_MAX_BYTES = 8 << 20   # keep support VMEM-resident up to this


# ------------------------------- helpers -------------------------------------

def _round_up(v, m):
    return ((v + m - 1) // m) * m


def _pad_to(a, shape):
    pads = [(0, t - s) for s, t in zip(a.shape, shape)]
    return jnp.pad(a, pads)


def _physical_vmem_bytes():
    """Physical VMEM of the current TPU generation; conservative fallback."""
    try:
        info = pltpu.get_tpu_info()
        v = getattr(info, "vmem_capacity_bytes", None)
        if v:
            return int(v)
    except Exception:
        pass
    return 64 << 20   # v7x per-core size; safe lower bound on every generation


def _vmem_limit_bytes():
    """Scoped-VMEM limit to request: well above the 16/32 MiB defaults, with
    headroom below physical capacity (v7x-safe)."""
    phys = _physical_vmem_bytes()
    return int(min(phys - (4 << 20), 112 << 20))


def _default_fuse_max_nodes():
    """Largest node count whose bf16 adj fits comfortably resident in VMEM
    (generation-specific: ~4k on v7x, ~6k on v5e/v6e)."""
    budget = int(_physical_vmem_bytes() * 0.5)      # resident adj budget (bf16)
    n = int(math.isqrt(max(budget // 2, 1)))
    return max((n // 128) * 128, 1024)


def _pick_tile(n_pad, cap):
    """Largest multiple of 128 that is <= cap and divides n_pad (n_pad is a
    multiple of 128, so 128 always works).  Adapting the tile avoids the
    ragged-edge blowup of rounding N up to a fixed large tile."""
    cap = min(cap, n_pad)
    for t in range(cap - cap % 128, 127, -128):
        if n_pad % t == 0:
            return t
    return 128


def init_gc_params(key, f_in, f_out):
    """Mimics GraphConvolution.reset_parameters: uniform(-stdv, stdv), stdv=1/sqrt(f_out)."""
    stdv = 1.0 / math.sqrt(f_out)
    kw, kb = jax.random.split(key)
    w = jax.random.uniform(kw, (f_in, f_out), jnp.float32, -stdv, stdv)
    b = jax.random.uniform(kb, (1, f_out), jnp.float32, -stdv, stdv)
    return w, b


# ----------------------- tiled per-layer kernels (large N) -------------------

def _support_kernel(x_ref, w_ref, o_ref):
    """support = x @ W for one row block (f32 accumulate, store bf16)."""
    o_ref[...] = jnp.dot(x_ref[...], w_ref[...],
                         preferred_element_type=jnp.float32).astype(o_ref.dtype)


def gcn_support(x_p, w_p, *, out_dtype):
    """Compute support = x_p @ w_p once per layer (HBM-read x once)."""
    n_pad, f_in = x_p.shape
    f_out = w_p.shape[1]
    ts = _pick_tile(n_pad, TS_CAP)
    return pl.pallas_call(
        _support_kernel,
        out_shape=jax.ShapeDtypeStruct((n_pad, f_out), out_dtype),
        grid_spec=pltpu.PrefetchScalarGridSpec(
            num_scalar_prefetch=0,
            grid=(n_pad // ts,),
            in_specs=[
                pl.BlockSpec((ts, f_in), lambda i: (i, 0)),        # x rows
                pl.BlockSpec((f_in, f_out), lambda i: (0, 0)),     # W resident
            ],
            out_specs=pl.BlockSpec((ts, f_out), lambda i: (i, 0)),
        ),
        compiler_params=pltpu.CompilerParams(
            dimension_semantics=("parallel",),
            vmem_limit_bytes=_vmem_limit_bytes(),
        ),
    )(x_p, w_p)


def _gcn_aggregate_kernel(support_ref, adj_ref, b_ref, o_ref, acc_ref, *,
                          apply_relu, tk, resident):
    """Grid = (row-blocks i, reduction-blocks k); k is innermost/"arbitrary".

    Per step: acc += adj[i, k] @ support[k]  (bf16 x bf16 -> f32).
    Bias / ReLU / store happen exactly once per output tile (k == last).
    """
    k = pl.program_id(1)

    @pl.when(k == 0)
    def _():
        acc_ref[...] = jnp.zeros_like(acc_ref)

    if resident:
        # support is VMEM-resident (constant index map); take the k-th slab.
        start = pl.multiple_of(k * tk, 128)
        sup = support_ref[pl.ds(start, tk), :]
    else:
        sup = support_ref[...]

    acc_ref[...] += jnp.dot(adj_ref[...], sup,
                            preferred_element_type=jnp.float32)

    @pl.when(k == pl.num_programs(1) - 1)
    def _():
        out = acc_ref[...] + b_ref[...]          # bias added once per tile
        if apply_relu:
            out = jnp.maximum(out, 0.0)
        o_ref[...] = out.astype(o_ref.dtype)


def gcn_aggregate(support_p, adj_p, b_p, *, apply_relu, out_dtype):
    """out = adj @ support + b (+ReLU), tiled + pipelined over adj."""
    n_pad, f_out = support_p.shape
    tm = _pick_tile(n_pad, TM_CAP)
    tk = _pick_tile(n_pad, TK_CAP)

    # Keep support fully VMEM-resident when small (HBM-read once per layer);
    # otherwise stream it blocked by k like adj.
    resident = (n_pad * f_out * support_p.dtype.itemsize
                <= SUPPORT_RESIDENT_MAX_BYTES)
    if resident:
        sup_spec = pl.BlockSpec((n_pad, f_out), lambda i, k: (0, 0))
    else:
        sup_spec = pl.BlockSpec((tk, f_out), lambda i, k: (k, 0))

    kernel = functools.partial(_gcn_aggregate_kernel,
                               apply_relu=apply_relu, tk=tk, resident=resident)

    return pl.pallas_call(
        kernel,
        out_shape=jax.ShapeDtypeStruct((n_pad, f_out), out_dtype),
        grid_spec=pltpu.PrefetchScalarGridSpec(
            num_scalar_prefetch=0,
            grid=(n_pad // tm, n_pad // tk),
            in_specs=[
                sup_spec,                                           # support
                pl.BlockSpec((tm, tk), lambda i, k: (i, k)),        # adj tile
                pl.BlockSpec((1, f_out), lambda i, k: (0, 0)),      # b resident
            ],
            out_specs=pl.BlockSpec((tm, f_out), lambda i, k: (i, 0)),
            scratch_shapes=[pltpu.VMEM((tm, f_out), jnp.float32)],
        ),
        compiler_params=pltpu.CompilerParams(
            dimension_semantics=("parallel", "arbitrary"),
            vmem_limit_bytes=_vmem_limit_bytes(),
        ),
    )(support_p, adj_p, b_p)


# ----------------------- fused 4-layer kernel (adj resident) -----------------

def _gcn4_fused_kernel(x_ref, adj_ref,
                       w1_ref, b1_ref, w2_ref, b2_ref,
                       w3_ref, b3_ref, w4_ref, b4_ref,
                       o_ref):
    adj = adj_ref[...]                 # adj read from HBM exactly once
    act_dtype = adj.dtype

    def layer(h, w_ref, b_ref, relu):
        s = jnp.dot(h, w_ref[...], preferred_element_type=jnp.float32)
        out = jnp.dot(adj, s.astype(act_dtype),
                      preferred_element_type=jnp.float32)
        out = out + b_ref[...]
        if relu:
            out = jnp.maximum(out, 0.0)
        return out

    h = x_ref[...]
    h = layer(h, w1_ref, b1_ref, True).astype(act_dtype)
    # dropout (eval mode) == identity
    h = layer(h, w2_ref, b2_ref, True).astype(act_dtype)
    h = layer(h, w3_ref, b3_ref, True).astype(act_dtype)
    # dropout (eval mode) == identity
    o_ref[...] = layer(h, w4_ref, b4_ref, False).astype(o_ref.dtype)


def gcn4_fused(x_p, adj_p, params_p):
    # NOTE: single TensorCore (no grid).  On v7x this leaves the second TC
    # idle, but reading adj once instead of 4x still wins for graphs that fit
    # the (generation-specific) VMEM budget.
    n_pad = adj_p.shape[0]
    f_out = params_p[-1][0].shape[1]
    flat = []
    for w, b in params_p:
        flat += [w, b]
    vmem_spec = pl.BlockSpec(memory_space=pltpu.MemorySpace.VMEM)
    return pl.pallas_call(
        _gcn4_fused_kernel,
        out_shape=jax.ShapeDtypeStruct((n_pad, f_out), jnp.float32),
        in_specs=[vmem_spec] * (2 + len(flat)),
        out_specs=vmem_spec,
        compiler_params=pltpu.CompilerParams(
            vmem_limit_bytes=_vmem_limit_bytes(),
        ),
    )(x_p, adj_p, *flat)


# ------------------------------ forward pass --------------------------------

def _prepare_padded(x, adj, params, n_pad, compute_dtype):
    nfeat = x.shape[1]
    dims = [nfeat] + [w.shape[1] for (w, _) in params]
    dims_p = [_round_up(d, LANE) for d in dims]

    x_p = _pad_to(x, (n_pad, dims_p[0])).astype(compute_dtype)
    adj_p = _pad_to(adj, (n_pad, n_pad)).astype(compute_dtype)
    params_p = []
    for l, (w, b) in enumerate(params):
        w_p = _pad_to(w, (dims_p[l], dims_p[l + 1])).astype(compute_dtype)
        b_p = _pad_to(b, (1, dims_p[l + 1])).astype(jnp.float32)
        params_p.append((w_p, b_p))
    return x_p, adj_p, params_p


def gcn_layer_4_forward(x, adj, params, *, compute_dtype=jnp.bfloat16,
                        fuse_max_nodes=None):
    """Forward pass of GCN_layer_4 (eval mode: dropout == identity)."""
    n = x.shape[0]
    nclass = params[-1][0].shape[1]
    if fuse_max_nodes is None:
        fuse_max_nodes = _default_fuse_max_nodes()

    # Node dim padded to 128 in both paths: lane-dense adj and aligned k-slabs.
    n_pad = _round_up(n, LANE)
    x_p, adj_p, params_p = _prepare_padded(x, adj, params, n_pad, compute_dtype)

    if n <= fuse_max_nodes:
        # adj resident in VMEM, one kernel for all 4 layers.
        out = gcn4_fused(x_p, adj_p, params_p)
    else:
        # Large graph: per layer, support = h @ W once, then tiled adj @ support.
        h = x_p
        n_layers = len(params_p)
        for l, (w_p, b_p) in enumerate(params_p):
            last = l == n_layers - 1
            support = gcn_support(h, w_p, out_dtype=compute_dtype)
            h = gcn_aggregate(
                support, adj_p, b_p,
                apply_relu=not last,
                out_dtype=jnp.float32 if last else compute_dtype)
        out = h

    return out[:n, :nclass]


# ------------------------------ references ----------------------------------

def reference_forward_f32(x, adj, params):
    (w1, b1), (w2, b2), (w3, b3), (w4, b4) = params
    h = jnp.maximum(adj @ (x @ w1) + b1, 0.0)
    h = jnp.maximum(adj @ (h @ w2) + b2, 0.0)
    h = jnp.maximum(adj @ (h @ w3) + b3, 0.0)
    return adj @ (h @ w4) + b4


def reference_forward_quantized(x, adj, params, compute_dtype=jnp.bfloat16):
    """Same bf16-compute / f32-accumulate recipe the kernels use."""
    adj_c = adj.astype(compute_dtype)
    h = x.astype(compute_dtype)
    n_layers = len(params)
    for l, (w, b) in enumerate(params):
        s = jnp.dot(h, w.astype(compute_dtype),
                    preferred_element_type=jnp.float32)
        out = jnp.dot(adj_c, s.astype(compute_dtype),
                      preferred_element_type=jnp.float32) + b
        if l < n_layers - 1:
            h = jnp.maximum(out, 0.0).astype(compute_dtype)
        else:
            return out


# --------------------------------- main --------------------------------------

if __name__ == "__main__":
    nfeat, nhid, nclass = 16, 32, 8

    key = jax.random.PRNGKey(0)
    kp, kd1, kd2 = jax.random.split(key, 3)
    k1, k2, k3, k4 = jax.random.split(kp, 4)
    params = [
        init_gc_params(k1, nfeat, nhid),
        init_gc_params(k2, nhid, nhid),
        init_gc_params(k3, nhid, nhid),
        init_gc_params(k4, nhid, nclass),
    ]

    def make_inputs(k, n):
        kx, kadj = jax.random.split(k)
        x = jax.random.normal(kx, (n, nfeat), jnp.float32)
        a = jax.random.uniform(kadj, (n, n), jnp.float32)
        a = (a + a.T) * 0.5 + jnp.eye(n, dtype=jnp.float32)
        adj = a / jnp.sum(a, axis=1, keepdims=True)   # row-normalized w/ self loops
        return x, adj

    fwd_default = jax.jit(gcn_layer_4_forward)                       # fused path
    fwd_tiled = jax.jit(functools.partial(gcn_layer_4_forward,
                                          fuse_max_nodes=0))         # force tiled

    # Case 1: tiny graph -> fused single-kernel path (adj resident in VMEM).
    x1, adj1 = make_inputs(kd1, 8)
    out1 = jax.block_until_ready(fwd_default(x1, adj1, params))
    assert out1.shape == (8, nclass), out1.shape
    refq1 = reference_forward_quantized(x1, adj1, params)
    ref1 = reference_forward_f32(x1, adj1, params)
    assert jnp.allclose(out1, refq1, atol=1e-2, rtol=1e-2), "fused vs bf16 ref"
    assert jnp.allclose(out1, ref1, atol=5e-2, rtol=5e-2), "fused vs f32 ref"

    # Case 2: larger graph, forced through the tiled per-layer path
    # (exercises multi-block grid: N=1100 -> n_pad=1152, 384x384 adj tiles,
    # resident support, accumulator init/finalize, node/feature padding).
    x2, adj2 = make_inputs(kd2, 1100)
    out2 = jax.block_until_ready(fwd_tiled(x2, adj2, params))
    assert out2.shape == (1100, nclass), out2.shape
    refq2 = reference_forward_quantized(x2, adj2, params)
    ref2 = reference_forward_f32(x2, adj2, params)
    assert jnp.allclose(out2, refq2, atol=1e-2, rtol=1e-2), "tiled vs bf16 ref"
    assert jnp.allclose(out2, ref2, atol=5e-2, rtol=5e-2), "tiled vs f32 ref"

    print("KERNEL_OK")
</pallas_src>

<mosaic_0001>
module attributes {stable_mosaic.version = 11 : i64} {
  func.func @_gcn4_fused_kernel(%arg0: memref<128x128xbf16, #tpu.memory_space<vmem>>, %arg1: memref<128x128xbf16, #tpu.memory_space<vmem>>, %arg2: memref<128x128xbf16, #tpu.memory_space<vmem>>, %arg3: memref<1x128xf32, #tpu.memory_space<vmem>>, %arg4: memref<128x128xbf16, #tpu.memory_space<vmem>>, %arg5: memref<1x128xf32, #tpu.memory_space<vmem>>, %arg6: memref<128x128xbf16, #tpu.memory_space<vmem>>, %arg7: memref<1x128xf32, #tpu.memory_space<vmem>>, %arg8: memref<128x128xbf16, #tpu.memory_space<vmem>>, %arg9: memref<1x128xf32, #tpu.memory_space<vmem>>, %arg10: memref<128x128xf32, #tpu.memory_space<vmem>>) attributes {dimension_semantics = [], scalar_prefetch = 0 : i64, scratch_operands = 0 : i64, tpu.core_type = #tpu.core_type<tc>} {
    %c0 = arith.constant 0 : index
    %c0_0 = arith.constant 0 : index
    %0 = vector.load %arg1[%c0, %c0_0] : memref<128x128xbf16, #tpu.memory_space<vmem>>, vector<128x128xbf16>
    %c0_1 = arith.constant 0 : index
    %c0_2 = arith.constant 0 : index
    %1 = vector.load %arg0[%c0_1, %c0_2] : memref<128x128xbf16, #tpu.memory_space<vmem>>, vector<128x128xbf16>
    %c0_3 = arith.constant 0 : index
    %c0_4 = arith.constant 0 : index
    %2 = vector.load %arg2[%c0_3, %c0_4] : memref<128x128xbf16, #tpu.memory_space<vmem>>, vector<128x128xbf16>
    %cst = arith.constant dense<0.000000e+00> : vector<128x128xf32>
    %3 = tpu.matmul %1, %2, %cst {dimension_numbers = #tpu.dot_dimension_numbers<[1], [0], [0], [1], [0, 0, 1, 1], [], []>} : vector<128x128xbf16>, vector<128x128xbf16>, vector<128x128xf32> -> vector<128x128xf32>
    %4 = arith.truncf %3 : vector<128x128xf32> to vector<128x128xbf16>
    %cst_5 = arith.constant dense<0.000000e+00> : vector<128x128xf32>
    %5 = tpu.matmul %0, %4, %cst_5 {dimension_numbers = #tpu.dot_dimension_numbers<[1], [0], [0], [1], [0, 0, 1, 1], [], []>} : vector<128x128xbf16>, vector<128x128xbf16>, vector<128x128xf32> -> vector<128x128xf32>
    %c0_6 = arith.constant 0 : index
    %c0_7 = arith.constant 0 : index
    %6 = vector.load %arg3[%c0_6, %c0_7] : memref<1x128xf32, #tpu.memory_space<vmem>>, vector<1x128xf32>
    %7 = vector.broadcast %6 : vector<1x128xf32> to vector<128x128xf32>
    %8 = arith.addf %5, %7 : vector<128x128xf32>
    %cst_8 = arith.constant 0.000000e+00 : f32
    %9 = vector.broadcast %cst_8 : f32 to vector<128x128xf32>
    %10 = arith.maximumf %8, %9 : vector<128x128xf32>
    %11 = arith.truncf %10 : vector<128x128xf32> to vector<128x128xbf16>
    %c0_9 = arith.constant 0 : index
    %c0_10 = arith.constant 0 : index
    %12 = vector.load %arg4[%c0_9, %c0_10] : memref<128x128xbf16, #tpu.memory_space<vmem>>, vector<128x128xbf16>
    %cst_11 = arith.constant dense<0.000000e+00> : vector<128x128xf32>
    %13 = tpu.matmul %11, %12, %cst_11 {dimension_numbers = #tpu.dot_dimension_numbers<[1], [0], [0], [1], [0, 0, 1, 1], [], []>} : vector<128x128xbf16>, vector<128x128xbf16>, vector<128x128xf32> -> vector<128x128xf32>
    %14 = arith.truncf %13 : vector<128x128xf32> to vector<128x128xbf16>
    %cst_12 = arith.constant dense<0.000000e+00> : vector<128x128xf32>
    %15 = tpu.matmul %0, %14, %cst_12 {dimension_numbers = #tpu.dot_dimension_numbers<[1], [0], [0], [1], [0, 0, 1, 1], [], []>} : vector<128x128xbf16>, vector<128x128xbf16>, vector<128x128xf32> -> vector<128x128xf32>
    %c0_13 = arith.constant 0 : index
    %c0_14 = arith.constant 0 : index
    %16 = vector.load %arg5[%c0_13, %c0_14] : memref<1x128xf32, #tpu.memory_space<vmem>>, vector<1x128xf32>
    %17 = vector.broadcast %16 : vector<1x128xf32> to vector<128x128xf32>
    %18 = arith.addf %15, %17 : vector<128x128xf32>
    %cst_15 = arith.constant 0.000000e+00 : f32
    %19 = vector.broadcast %cst_15 : f32 to vector<128x128xf32>
    %20 = arith.maximumf %18, %19 : vector<128x128xf32>
    %21 = arith.truncf %20 : vector<128x128xf32> to vector<128x128xbf16>
    %c0_16 = arith.constant 0 : index
    %c0_17 = arith.constant 0 : index
    %22 = vector.load %arg6[%c0_16, %c0_17] : memref<128x128xbf16, #tpu.memory_space<vmem>>, vector<128x128xbf16>
    %cst_18 = arith.constant dense<0.000000e+00> : vector<128x128xf32>
    %23 = tpu.matmul %21, %22, %cst_18 {dimension_numbers = #tpu.dot_dimension_numbers<[1], [0], [0], [1], [0, 0, 1, 1], [], []>} : vector<128x128xbf16>, vector<128x128xbf16>, vector<128x128xf32> -> vector<128x128xf32>
    %24 = arith.truncf %23 : vector<128x128xf32> to vector<128x128xbf16>
    %cst_19 = arith.constant dense<0.000000e+00> : vector<128x128xf32>
    %25 = tpu.matmul %0, %24, %cst_19 {dimension_numbers = #tpu.dot_dimension_numbers<[1], [0], [0], [1], [0, 0, 1, 1], [], []>} : vector<128x128xbf16>, vector<128x128xbf16>, vector<128x128xf32> -> vector<128x128xf32>
    %c0_20 = arith.constant 0 : index
    %c0_21 = arith.constant 0 : index
    %26 = vector.load %arg7[%c0_20, %c0_21] : memref<1x128xf32, #tpu.memory_space<vmem>>, vector<1x128xf32>
    %27 = vector.broadcast %26 : vector<1x128xf32> to vector<128x128xf32>
    %28 = arith.addf %25, %27 : vector<128x128xf32>
    %cst_22 = arith.constant 0.000000e+00 : f32
    %29 = vector.broadcast %cst_22 : f32 to vector<128x128xf32>
    %30 = arith.maximumf %28, %29 : vector<128x128xf32>
    %31 = arith.truncf %30 : vector<128x128xf32> to vector<128x128xbf16>
    %c0_23 = arith.constant 0 : index
    %c0_24 = arith.constant 0 : index
    %32 = vector.load %arg8[%c0_23, %c0_24] : memref<128x128xbf16, #tpu.memory_space<vmem>>, vector<128x128xbf16>
    %cst_25 = arith.constant dense<0.000000e+00> : vector<128x128xf32>
    %33 = tpu.matmul %31, %32, %cst_25 {dimension_numbers = #tpu.dot_dimension_numbers<[1], [0], [0], [1], [0, 0, 1, 1], [], []>} : vector<128x128xbf16>, vector<128x128xbf16>, vector<128x128xf32> -> vector<128x128xf32>
    %34 = arith.truncf %33 : vector<128x128xf32> to vector<128x128xbf16>
    %cst_26 = arith.constant dense<0.000000e+00> : vector<128x128xf32>
    %35 = tpu.matmul %0, %34, %cst_26 {dimension_numbers = #tpu.dot_dimension_numbers<[1], [0], [0], [1], [0, 0, 1, 1], [], []>} : vector<128x128xbf16>, vector<128x128xbf16>, vector<128x128xf32> -> vector<128x128xf32>
    %c0_27 = arith.constant 0 : index
    %c0_28 = arith.constant 0 : index
    %36 = vector.load %arg9[%c0_27, %c0_28] : memref<1x128xf32, #tpu.memory_space<vmem>>, vector<1x128xf32>
    %37 = vector.broadcast %36 : vector<1x128xf32> to vector<128x128xf32>
    %38 = arith.addf %35, %37 : vector<128x128xf32>
    %c0_29 = arith.constant 0 : index
    %c0_30 = arith.constant 0 : index
    %39 = vector.load %arg10[%c0_29, %c0_30] : memref<128x128xf32, #tpu.memory_space<vmem>>, vector<128x128xf32>
    tpu.vector_store %arg10[%c0_29, %c0_30], %38 {strides = array<i32>} : memref<128x128xf32, #tpu.memory_space<vmem>>, vector<128x128xf32>,
    return
  }
}

</mosaic_0001>

<bundles_post_ra>
// kernel: gcn_layer_4_forward.1
= control target key start
LH: loop header
LB: loop body
LE: loop exit
PB: predicated region body
PF: predicated region fallthrough
CT: control target
= control target key end

     0   :  { %s2139_s2 = inlined_call_operand.vmem [shape: bf16[128,128], index: 2, kind: input, shape index: {}]   ;;  %s2140_s0 = inlined_call_operand.vmem [shape: bf16[128,128], index: 0, kind: input, shape index: {}]   ;;  %s2141_s1 = inlined_call_operand.vmem [shape: bf16[128,128], index: 1, kind: input, shape index: {}]   ;;  %s2142_s4 = inlined_call_operand.vmem [shape: bf16[128,128], index: 4, kind: input, shape index: {}]   ;;  %s2143_s3 = inlined_call_operand.vmem [shape: f32[1,128], index: 3, kind: input, shape index: {}]   ;;  %s2144_s6 = inlined_call_operand.vmem [shape: bf16[128,128], index: 6, kind: input, shape index: {}]   ;;  %s2145_s5 = inlined_call_operand.vmem [shape: f32[1,128], index: 5, kind: input, shape index: {}]   ;;  %s2146_s8 = inlined_call_operand.vmem [shape: bf16[128,128], index: 8, kind: input, shape index: {}]   ;;  %s2147_s7 = inlined_call_operand.vmem [shape: f32[1,128], index: 7, kind: input, shape index: {}]   ;;  %s2148_s9 = inlined_call_operand.vmem [shape: f32[1,128], index: 9, kind: input, shape index: {}]   ;;  %s2149_s10 = inlined_call_operand.vmem [shape: f32[128,128], index: 10, kind: output, shape index: {}]  }
   0x1   :  { %v1784_v0 = vld [vmem:[%s2139_s2] sm:$0xff]   ;;  %v1785_v1 = vld [vmem:[%s2139_s2 + $0x8] sm:$0xff]   ;;  %v1786_v2 = vld [vmem:[%s2139_s2 + $0x10] sm:$0xff]  }
   0x2   :  { %1528 = vmatprep.subr.bf16.mxu0 %v1784_v0  ;;  %v1787_v3 = vld [vmem:[%s2139_s2 + $0x18] sm:$0xff]   ;;  %v1792_v4 = vld [vmem:[%s2140_s0] sm:$0xff]   ;;  %v1789_v6 = vld [vmem:[%s2139_s2 + $0x28] sm:$0xff]  }
   0x3   :  { %1529 = vmatpush3.bf16.msra.mxu0 %v1784_v0  ;;  %1544 = vmatprep.mubr.bf16.mxu0 %v1792_v4  ;;  %v1788_v5 = vld [vmem:[%s2139_s2 + $0x20] sm:$0xff]   ;;  %v1790_v7 = vld [vmem:[%s2139_s2 + $0x30] sm:$0xff]   ;;  %v1791_v8 = vld [vmem:[%s2139_s2 + $0x38] sm:$0xff]  }
   0x4   :  { %1530 = vmatprep.subr.bf16.mxu0 %v1785_v1  ;;  %v1793_v9 = vld [vmem:[%s2140_s0 + $0x8] sm:$0xff]   ;;  %v1794_v10 = vld [vmem:[%s2140_s0 + $0x10] sm:$0xff]   ;;  %v1795_v11 = vld [vmem:[%s2140_s0 + $0x18] sm:$0xff]  }
   0x5   :  { %v1796_v12 = vld [vmem:[%s2140_s0 + $0x20] sm:$0xff]   ;;  %v1797_v13 = vld [vmem:[%s2140_s0 + $0x28] sm:$0xff]   ;;  %v1798_v14 = vld [vmem:[%s2140_s0 + $0x30] sm:$0xff]  }
   0x6   :  { %v1799_v15 = vld [vmem:[%s2140_s0 + $0x38] sm:$0xff]   ;;  %v1938_v16 = vld [vmem:[%s2141_s1] sm:$0xff]   ;;  %v1809_v18 = vld [vmem:[%s2142_s4 + $0x8] sm:$0xff]  }
   0x7   :  { %1531 = vmatpush3.bf16.msra.mxu0 %v1785_v1  ;;  %1576 = vmatprep.mubr.bf16.mxu1 %v1938_v16  ;;  %v1808_v17 = vld [vmem:[%s2142_s4] sm:$0xff]   ;;  %v1810_v19 = vld [vmem:[%s2142_s4 + $0x10] sm:$0xff]   ;;  %v1811_v20 = vld [vmem:[%s2142_s4 + $0x18] sm:$0xff]  }
   0x8   :  { %1532 = vmatprep.subr.bf16.mxu0 %v1786_v2  ;;  %v1812_v21 = vld [vmem:[%s2142_s4 + $0x20] sm:$0xff]   ;;  %v1813_v22 = vld [vmem:[%s2142_s4 + $0x28] sm:$0xff]   ;;  %v1967_v48 = vld [vmem:[%s2141_s1 + $0x10] sm:$0xff]  }
   0x9   :  { %v1962_v47 = vld [vmem:[%s2141_s1 + $0x8] sm:$0xff]   ;;  %v1974_v49 = vld [vmem:[%s2141_s1 + $0x18] sm:$0xff]   ;;  %v1979_v50 = vld [vmem:[%s2141_s1 + $0x20] sm:$0xff]  }
   0xa   :  { %v1986_v51 = vld [vmem:[%s2141_s1 + $0x28] sm:$0xff]   ;;  %v1991_v52 = vld [vmem:[%s2141_s1 + $0x30] sm:$0xff]   ;;  %v1998_v53 = vld [vmem:[%s2141_s1 + $0x38] sm:$0xff]  }
   0xb   :  { %1533 = vmatpush3.bf16.msra.mxu0 %v1786_v2  ;;  %v1814_v54 = vld [vmem:[%s2142_s4 + $0x30] sm:$0xff]   ;;  %v1815_v55 = vld [vmem:[%s2142_s4 + $0x38] sm:$0xff]   ;;  %v1364_v56 = vld [vmem:[%s2143_s3] ss:$0 sm:$0xff] }
   0xc   :  { %1534 = vmatprep.subr.bf16.mxu0 %v1787_v3 }
   0xf   :  { %1535 = vmatpush3.bf16.msra.mxu0 %v1787_v3 }
  0x10   :  { %1536 = vmatprep.subr.bf16.mxu0 %v1788_v5 }
  0x13   :  { %1537 = vmatpush3.bf16.msra.mxu0 %v1788_v5 }
  0x14   :  { %1538 = vmatprep.subr.bf16.mxu0 %v1789_v6 }
  0x17   :  { %1539 = vmatpush3.bf16.msra.mxu0 %v1789_v6 }
  0x18   :  { %1540 = vmatprep.subr.bf16.mxu0 %v1790_v7 }
  0x1b   :  { %1541 = vmatpush3.bf16.msra.mxu0 %v1790_v7 }
  0x1c   :  { %1542 = vmatprep.subr.bf16.mxu0 %v1791_v8 }
  0x1f   :  { %1543 = vmatpush3.bf16.msra.mxu0 %v1791_v8 }
  0x20   :  { %1592 = vmatprep.subr.bf16.mxu0 %v1808_v17 }
  0x22   :  { %1545 = vmatmul.mubr.bf16.vlgmr.msra.gmra.mrb[0].mxu0 %v1793_v9 }
  0x23   :  { %1548 = vmatprep.mubr.bf16.mxu0 %v1794_v10  ;;  %1593 = vmatpush3.bf16.msra.mxu0 %v1808_v17 }
  0x24   :  { %1594 = vmatprep.subr.bf16.mxu0 %v1809_v18 }
  0x27   :  { %1595 = vmatpush3.bf16.msra.mxu0 %v1809_v18 }
  0x28   :  { %1596 = vmatprep.subr.bf16.mxu0 %v1810_v19 }
  0x2a   :  { %1549 = vmatmul.mubr.bf16.gmra.mrb[4].mxu0 %v1795_v11 }
  0x2b   :  { %1552 = vmatprep.mubr.bf16.mxu0 %v1796_v12  ;;  %1597 = vmatpush3.bf16.msra.mxu0 %v1810_v19 }
  0x2c   :  { %1598 = vmatprep.subr.bf16.mxu0 %v1811_v20 }
  0x2f   :  { %1599 = vmatpush3.bf16.msra.mxu0 %v1811_v20 }
  0x30   :  { %1600 = vmatprep.subr.bf16.mxu0 %v1812_v21 }
  0x32   :  { %1553 = vmatmul.mubr.bf16.gmra.mrb[8].mxu0 %v1797_v13 }
  0x33   :  { %1556 = vmatprep.mubr.bf16.mxu0 %v1798_v14  ;;  %1601 = vmatpush3.bf16.msra.mxu0 %v1812_v21 }
  0x34   :  { %1602 = vmatprep.subr.bf16.mxu0 %v1813_v22 }
  0x37   :  { %1603 = vmatpush3.bf16.msra.mxu0 %v1813_v22 }
  0x38   :  { %1604 = vmatprep.subr.bf16.mxu0 %v1814_v54 }
  0x3a   :  { %1557 = vmatmul.mubr.bf16.gmra.mrb[12].mxu0 %v1799_v15 }
  0x3b   :  { %1605 = vmatpush3.bf16.msra.mxu0 %v1814_v54 }
  0x3c   :  { %1606 = vmatprep.subr.bf16.mxu0 %v1815_v55 }
  0x3f   :  { %1607 = vmatpush3.bf16.msra.mxu0 %v1815_v55 }
  0xf5   :  { %v1546_v23 = vpop.f32.mrb[0].mxu0 }
  0xf6   :  { %v214_v24 = vpop.f32.mrb[1].mxu0 }
  0xf7   :  { %v1547_v25 = vpop.f32.mrb[2].mxu0 }
  0xf8   :  { %v278_v26 = vpack.c.bf16 %v1547_v25, %v1546_v23  ;;  %v217_v27 = vpop.f32.mrb[3].mxu0 }
  0xf9   :  { %v277_v28 = vpack.c.bf16 %v217_v27, %v214_v24 }
  0xfb   :  { %1560 = vmatprep.subr.bf16.mxu1 %v277_v28 }
  0xfc   :  { %1561 = vmatpush3.bf16.msra.mxu1 %v277_v28 }
  0xfd   :  { %v1550_v29 = vpop.f32.mrb[4].mxu0  ;;  %1562 = vmatprep.subr.bf16.mxu1 %v278_v26 }
  0xfe   :  { %v230_v30 = vpop.f32.mrb[5].mxu0 }
  0xff   :  { %v1551_v31 = vpop.f32.mrb[6].mxu0 }
 0x100   :  { %v280_v32 = vpack.c.bf16 %v1551_v31, %v1550_v29  ;;  %v233_v33 = vpop.f32.mrb[7].mxu0  ;;  %1563 = vmatpush3.bf16.msra.mxu1 %v278_v26 }
 0x101   :  { %v279_v34 = vpack.c.bf16 %v233_v33, %v230_v30 }
 0x103   :  { %1564 = vmatprep.subr.bf16.mxu1 %v279_v34 }
 0x104   :  { %1565 = vmatpush3.bf16.msra.mxu1 %v279_v34 }
 0x105   :  { %v1554_v35 = vpop.f32.mrb[8].mxu0  ;;  %1566 = vmatprep.subr.bf16.mxu1 %v280_v32 }
 0x106   :  { %v246_v36 = vpop.f32.mrb[9].mxu0 }
 0x107   :  { %v1555_v37 = vpop.f32.mrb[10].mxu0 }
 0x108   :  { %v282_v38 = vpack.c.bf16 %v1555_v37, %v1554_v35  ;;  %v249_v39 = vpop.f32.mrb[11].mxu0  ;;  %1567 = vmatpush3.bf16.msra.mxu1 %v280_v32 }
 0x109   :  { %v281_v40 = vpack.c.bf16 %v249_v39, %v246_v36 }
 0x10b   :  { %1568 = vmatprep.subr.bf16.mxu1 %v281_v40 }
 0x10c   :  { %1569 = vmatpush3.bf16.msra.mxu1 %v281_v40 }
 0x10d   :  { %v1558_v41 = vpop.f32.mrb[12].mxu0  ;;  %1570 = vmatprep.subr.bf16.mxu1 %v282_v38 }
 0x10e   :  { %v262_v42 = vpop.f32.mrb[13].mxu0 }
 0x10f   :  { %v1559_v43 = vpop.f32.mrb[14].mxu0 }
 0x110   :  { %v284_v44 = vpack.c.bf16 %v1559_v43, %v1558_v41  ;;  %v265_v45 = vpop.f32.mrb[15].mxu0  ;;  %1571 = vmatpush3.bf16.msra.mxu1 %v282_v38 }
 0x111   :  { %v283_v46 = vpack.c.bf16 %v265_v45, %v262_v42 }
 0x113   :  { %1572 = vmatprep.subr.bf16.mxu1 %v283_v46 }
 0x114   :  { %1573 = vmatpush3.bf16.msra.mxu1 %v283_v46 }
 0x115   :  { %1574 = vmatprep.subr.bf16.mxu1 %v284_v44 }
 0x118   :  { %1575 = vmatpush3.bf16.msra.mxu1 %v284_v44 }
 0x11b   :  { %1577 = vmatmul.mubr.bf16.vlgmr.msra.gmra.mrb[0].mxu1 %v1962_v47 }
 0x11c   :  { %1580 = vmatprep.mubr.bf16.mxu1 %v1967_v48 }
 0x123   :  { %1581 = vmatmul.mubr.bf16.gmra.mrb[4].mxu1 %v1974_v49 }
 0x124   :  { %1584 = vmatprep.mubr.bf16.mxu1 %v1979_v50 }
 0x12b   :  { %1585 = vmatmul.mubr.bf16.gmra.mrb[8].mxu1 %v1986_v51 }
 0x12c   :  { %1588 = vmatprep.mubr.bf16.mxu1 %v1991_v52 }
 0x133   :  { %1589 = vmatmul.mubr.bf16.gmra.mrb[12].mxu1 %v1998_v53 }
 0x134   :  { %1640 = vmatprep.mubr.bf16.mxu1 %v1938_v16 }
 0x1ee   :  { %v1578_v57 = vpop.f32.mrb[0].mxu1 }
 0x1ef   :  { %v383_v58 = vadd.f32 %v1578_v57, %v1364_v56  ;;  %v374_v59 = vpop.f32.mrb[1].mxu1 }
 0x1f0   :  { %v375_v60 = vadd.f32 %v1364_v56, %v374_v59  ;;  %v1579_v61 = vpop.f32.mrb[2].mxu1  ;;  %v1817_v59 = vld [vmem:[%s2144_s6 + $0x8] sm:$0xff]  }
 0x1f1   :  { %v386_v62 = vadd.f32 %v1579_v61, %v1364_v56  ;;  %v377_v63 = vpop.f32.mrb[3].mxu1  ;;  %v439_v1 = vmax.f32 %v383_v58, 0.0  ;;  %v1816_v58 = vld [vmem:[%s2144_s6] sm:$0xff]  }
 0x1f2   :  { %v378_v0 = vadd.f32 %v1364_v56, %v377_v63  ;;  %v437_v3 = vmax.f32 %v375_v60, 0.0  ;;  %1656 = vmatprep.subr.bf16.mxu0 %v1816_v58  ;;  %v1819_v60 = vld [vmem:[%s2144_s6 + $0x18] sm:$0xff]   ;;  %v1820_v61 = vld [vmem:[%s2144_s6 + $0x20] sm:$0xff]  }
 0x1f3   :  { %v440_v2 = vmax.f32 %v386_v62, 0.0  ;;  %v1821_v62 = vld [vmem:[%s2144_s6 + $0x28] sm:$0xff]  }
 0x1f4   :  { %v438_v4 = vmax.f32 %v378_v0, 0.0 }
 0x1f5   :  { %v454_v5 = vpack.c.bf16 %v440_v2, %v439_v1 }
 0x1f6   :  { %v453_v6 = vpack.c.bf16 %v438_v4, %v437_v3  ;;  %v1582_v7 = vpop.f32.mrb[4].mxu1 }
 0x1f7   :  { %v399_v8 = vadd.f32 %v1582_v7, %v1364_v56  ;;  %v390_v9 = vpop.f32.mrb[5].mxu1 }
 0x1f8   :  { %v391_v10 = vadd.f32 %v1364_v56, %v390_v9  ;;  %v1583_v11 = vpop.f32.mrb[6].mxu1  ;;  %1608 = vmatprep.mubr.bf16.mxu0 %v453_v6 }
 0x1f9   :  { %v402_v12 = vadd.f32 %v1583_v11, %v1364_v56  ;;  %v393_v13 = vpop.f32.mrb[7].mxu1  ;;  %1609 = vmatmul.mubr.bf16.vlgmr.msra.gmra.mrb[16].mxu0 %v454_v5  ;;  %v443_v15 = vmax.f32 %v399_v8, 0.0 }
 0x1fa   :  { %v394_v14 = vadd.f32 %v1364_v56, %v393_v13  ;;  %v441_v18 = vmax.f32 %v391_v10, 0.0  ;;  %1657 = vmatpush3.bf16.msra.mxu0 %v1816_v58 }
 0x1fb   :  { %v444_v17 = vmax.f32 %v402_v12, 0.0  ;;  %1658 = vmatprep.subr.bf16.mxu0 %v1817_v59 }
 0x1fc   :  { %v442_v19 = vmax.f32 %v394_v14, 0.0 }
 0x1fd   :  { %v456_v20 = vpack.c.bf16 %v444_v17, %v443_v15 }
 0x1fe   :  { %v455_v21 = vpack.c.bf16 %v442_v19, %v441_v18  ;;  %v1586_v22 = vpop.f32.mrb[8].mxu1  ;;  %1659 = vmatpush3.bf16.msra.mxu0 %v1817_v59 }
 0x1ff   :  { %v415_v23 = vadd.f32 %v1586_v22, %v1364_v56  ;;  %v406_v24 = vpop.f32.mrb[9].mxu1 }
 0x200   :  { %v407_v25 = vadd.f32 %v1364_v56, %v406_v24  ;;  %v1587_v26 = vpop.f32.mrb[10].mxu1  ;;  %1612 = vmatprep.mubr.bf16.mxu0 %v455_v21  ;;  %v1822_v24 = vld [vmem:[%s2144_s6 + $0x30] sm:$0xff]  }
 0x201   :  { %v418_v27 = vadd.f32 %v1587_v26, %v1364_v56  ;;  %v409_v28 = vpop.f32.mrb[11].mxu1  ;;  %1613 = vmatmul.mubr.bf16.gmra.mrb[20].mxu0 %v456_v20  ;;  %v447_v30 = vmax.f32 %v415_v23, 0.0  ;;  %v1381_v26 = vld [vmem:[%s2145_s5] ss:$0 sm:$0xff] }
 0x202   :  { %v410_v29 = vadd.f32 %v1364_v56, %v409_v28  ;;  %v445_v32 = vmax.f32 %v407_v25, 0.0  ;;  %v1823_v25 = vld [vmem:[%s2144_s6 + $0x38] sm:$0xff]  }
 0x203   :  { %v448_v31 = vmax.f32 %v418_v27, 0.0 }
 0x204   :  { %v446_v33 = vmax.f32 %v410_v29, 0.0 }
 0x205   :  { %v458_v34 = vpack.c.bf16 %v448_v31, %v447_v30 }
 0x206   :  { %v457_v35 = vpack.c.bf16 %v446_v33, %v445_v32  ;;  %v1590_v36 = vpop.f32.mrb[12].mxu1 }
 0x207   :  { %v431_v37 = vadd.f32 %v1590_v36, %v1364_v56  ;;  %v422_v38 = vpop.f32.mrb[13].mxu1 }
 0x208   :  { %v423_v39 = vadd.f32 %v1364_v56, %v422_v38  ;;  %v1591_v40 = vpop.f32.mrb[14].mxu1  ;;  %1616 = vmatprep.mubr.bf16.mxu0 %v457_v35 }
 0x209   :  { %v434_v41 = vadd.f32 %v1591_v40, %v1364_v56  ;;  %v425_v42 = vpop.f32.mrb[15].mxu1  ;;  %1617 = vmatmul.mubr.bf16.gmra.mrb[24].mxu0 %v458_v34  ;;  %v451_v44 = vmax.f32 %v431_v37, 0.0 }
 0x20a   :  { %v426_v43 = vadd.f32 %v1364_v56, %v425_v42  ;;  %v449_v46 = vmax.f32 %v423_v39, 0.0  ;;  %v1818_v56 = vld [vmem:[%s2144_s6 + $0x10] sm:$0xff]  }
 0x20b   :  { %v452_v45 = vmax.f32 %v434_v41, 0.0  ;;  %1660 = vmatprep.subr.bf16.mxu0 %v1818_v56 }
 0x20c   :  { %v450_v54 = vmax.f32 %v426_v43, 0.0  ;;  %1661 = vmatpush3.bf16.msra.mxu0 %v1818_v56 }
 0x20d   :  { %v460_v55 = vpack.c.bf16 %v452_v45, %v451_v44  ;;  %1662 = vmatprep.subr.bf16.mxu0 %v1819_v60 }
 0x20e   :  { %v459_v57 = vpack.c.bf16 %v450_v54, %v449_v46 }
 0x210   :  { %1620 = vmatprep.mubr.bf16.mxu0 %v459_v57  ;;  %1663 = vmatpush3.bf16.msra.mxu0 %v1819_v60 }
 0x211   :  { %1621 = vmatmul.mubr.bf16.gmra.mrb[28].mxu0 %v460_v55  ;;  %1664 = vmatprep.subr.bf16.mxu0 %v1820_v61 }
 0x214   :  { %1665 = vmatpush3.bf16.msra.mxu0 %v1820_v61 }
 0x215   :  { %1666 = vmatprep.subr.bf16.mxu0 %v1821_v62 }
 0x218   :  { %1667 = vmatpush3.bf16.msra.mxu0 %v1821_v62 }
 0x219   :  { %1668 = vmatprep.subr.bf16.mxu0 %v1822_v24 }
 0x21c   :  { %1669 = vmatpush3.bf16.msra.mxu0 %v1822_v24 }
 0x21d   :  { %1670 = vmatprep.subr.bf16.mxu0 %v1823_v25 }
 0x220   :  { %1671 = vmatpush3.bf16.msra.mxu0 %v1823_v25 }
 0x2cc   :  { %v1610_v63 = vpop.f32.mrb[16].mxu0 }
 0x2cd   :  { %v559_v0 = vpop.f32.mrb[17].mxu0 }
 0x2ce   :  { %v1611_v1 = vpop.f32.mrb[18].mxu0 }
 0x2cf   :  { %v623_v2 = vpack.c.bf16 %v1611_v1, %v1610_v63  ;;  %v562_v3 = vpop.f32.mrb[19].mxu0 }
 0x2d0   :  { %v622_v4 = vpack.c.bf16 %v562_v3, %v559_v0 }
 0x2d2   :  { %1624 = vmatprep.subr.bf16.mxu1 %v622_v4 }
 0x2d3   :  { %1625 = vmatpush3.bf16.msra.mxu1 %v622_v4 }
 0x2d4   :  { %v1614_v5 = vpop.f32.mrb[20].mxu0  ;;  %1626 = vmatprep.subr.bf16.mxu1 %v623_v2 }
 0x2d5   :  { %v575_v6 = vpop.f32.mrb[21].mxu0 }
 0x2d6   :  { %v1615_v7 = vpop.f32.mrb[22].mxu0 }
 0x2d7   :  { %v625_v8 = vpack.c.bf16 %v1615_v7, %v1614_v5  ;;  %v578_v9 = vpop.f32.mrb[23].mxu0  ;;  %1627 = vmatpush3.bf16.msra.mxu1 %v623_v2 }
 0x2d8   :  { %v624_v10 = vpack.c.bf16 %v578_v9, %v575_v6 }
 0x2da   :  { %1628 = vmatprep.subr.bf16.mxu1 %v624_v10 }
 0x2db   :  { %1629 = vmatpush3.bf16.msra.mxu1 %v624_v10 }
 0x2dc   :  { %v1618_v11 = vpop.f32.mrb[24].mxu0  ;;  %1630 = vmatprep.subr.bf16.mxu1 %v625_v8 }
 0x2dd   :  { %v591_v12 = vpop.f32.mrb[25].mxu0 }
 0x2de   :  { %v1619_v13 = vpop.f32.mrb[26].mxu0 }
 0x2df   :  { %v627_v14 = vpack.c.bf16 %v1619_v13, %v1618_v11  ;;  %v594_v15 = vpop.f32.mrb[27].mxu0  ;;  %1631 = vmatpush3.bf16.msra.mxu1 %v625_v8 }
 0x2e0   :  { %v626_v17 = vpack.c.bf16 %v594_v15, %v591_v12 }
 0x2e2   :  { %1632 = vmatprep.subr.bf16.mxu1 %v626_v17 }
 0x2e3   :  { %1633 = vmatpush3.bf16.msra.mxu1 %v626_v17 }
 0x2e4   :  { %v1622_v18 = vpop.f32.mrb[28].mxu0  ;;  %1634 = vmatprep.subr.bf16.mxu1 %v627_v14 }
 0x2e5   :  { %v607_v19 = vpop.f32.mrb[29].mxu0 }
 0x2e6   :  { %v1623_v20 = vpop.f32.mrb[30].mxu0 }
 0x2e7   :  { %v629_v21 = vpack.c.bf16 %v1623_v20, %v1622_v18  ;;  %v610_v22 = vpop.f32.mrb[31].mxu0  ;;  %1635 = vmatpush3.bf16.msra.mxu1 %v627_v14 }
 0x2e8   :  { %v628_v23 = vpack.c.bf16 %v610_v22, %v607_v19 }
 0x2ea   :  { %1636 = vmatprep.subr.bf16.mxu1 %v628_v23 }
 0x2eb   :  { %1637 = vmatpush3.bf16.msra.mxu1 %v628_v23 }
 0x2ec   :  { %1638 = vmatprep.subr.bf16.mxu1 %v629_v21 }
 0x2ef   :  { %1639 = vmatpush3.bf16.msra.mxu1 %v629_v21 }
 0x2f2   :  { %1641 = vmatmul.mubr.bf16.vlgmr.msra.gmra.mrb[16].mxu1 %v1962_v47 }
 0x2f3   :  { %1644 = vmatprep.mubr.bf16.mxu1 %v1967_v48 }
 0x2fa   :  { %1645 = vmatmul.mubr.bf16.gmra.mrb[20].mxu1 %v1974_v49 }
 0x2fb   :  { %1648 = vmatprep.mubr.bf16.mxu1 %v1979_v50 }
 0x302   :  { %1649 = vmatmul.mubr.bf16.gmra.mrb[24].mxu1 %v1986_v51 }
 0x303   :  { %1652 = vmatprep.mubr.bf16.mxu1 %v1991_v52 }
 0x30a   :  { %1653 = vmatmul.mubr.bf16.gmra.mrb[28].mxu1 %v1998_v53 }
 0x30b   :  { %1704 = vmatprep.mubr.bf16.mxu1 %v1938_v16 }
 0x3c5   :  { %v1642_v27 = vpop.f32.mrb[16].mxu1 }
 0x3c6   :  { %v680_v28 = vadd.f32 %v1642_v27, %v1381_v26  ;;  %v671_v29 = vpop.f32.mrb[17].mxu1 }
 0x3c7   :  { %v672_v30 = vadd.f32 %v1381_v26, %v671_v29  ;;  %v1643_v31 = vpop.f32.mrb[18].mxu1  ;;  %v1825_v29 = vld [vmem:[%s2146_s8 + $0x8] sm:$0xff]  }
 0x3c8   :  { %v683_v32 = vadd.f32 %v1643_v31, %v1381_v26  ;;  %v674_v33 = vpop.f32.mrb[19].mxu1  ;;  %v736_v35 = vmax.f32 %v680_v28, 0.0  ;;  %v1824_v28 = vld [vmem:[%s2146_s8] sm:$0xff]  }
 0x3c9   :  { %v675_v34 = vadd.f32 %v1381_v26, %v674_v33  ;;  %v734_v37 = vmax.f32 %v672_v30, 0.0  ;;  %1720 = vmatprep.subr.bf16.mxu0 %v1824_v28  ;;  %v1827_v30 = vld [vmem:[%s2146_s8 + $0x18] sm:$0xff]   ;;  %v1828_v31 = vld [vmem:[%s2146_s8 + $0x20] sm:$0xff]  }
 0x3ca   :  { %v737_v36 = vmax.f32 %v683_v32, 0.0  ;;  %v1829_v32 = vld [vmem:[%s2146_s8 + $0x28] sm:$0xff]  }
 0x3cb   :  { %v735_v38 = vmax.f32 %v675_v34, 0.0 }
 0x3cc   :  { %v751_v39 = vpack.c.bf16 %v737_v36, %v736_v35 }
 0x3cd   :  { %v750_v40 = vpack.c.bf16 %v735_v38, %v734_v37  ;;  %v1646_v41 = vpop.f32.mrb[20].mxu1 }
 0x3ce   :  { %v696_v42 = vadd.f32 %v1646_v41, %v1381_v26  ;;  %v687_v43 = vpop.f32.mrb[21].mxu1 }
 0x3cf   :  { %v688_v44 = vadd.f32 %v1381_v26, %v687_v43  ;;  %v1647_v45 = vpop.f32.mrb[22].mxu1  ;;  %1672 = vmatprep.mubr.bf16.mxu0 %v750_v40 }
 0x3d0   :  { %v699_v46 = vadd.f32 %v1647_v45, %v1381_v26  ;;  %v690_v54 = vpop.f32.mrb[23].mxu1  ;;  %1673 = vmatmul.mubr.bf16.vlgmr.msra.gmra.mrb[32].mxu0 %v751_v39  ;;  %v740_v57 = vmax.f32 %v696_v42, 0.0 }
 0x3d1   :  { %v691_v55 = vadd.f32 %v1381_v26, %v690_v54  ;;  %v738_v59 = vmax.f32 %v688_v44, 0.0  ;;  %1721 = vmatpush3.bf16.msra.mxu0 %v1824_v28 }
 0x3d2   :  { %v741_v58 = vmax.f32 %v699_v46, 0.0  ;;  %1722 = vmatprep.subr.bf16.mxu0 %v1825_v29 }
 0x3d3   :  { %v739_v56 = vmax.f32 %v691_v55, 0.0 }
 0x3d4   :  { %v753_v60 = vpack.c.bf16 %v741_v58, %v740_v57 }
 0x3d5   :  { %v752_v61 = vpack.c.bf16 %v739_v56, %v738_v59  ;;  %v1650_v62 = vpop.f32.mrb[24].mxu1  ;;  %1723 = vmatpush3.bf16.msra.mxu0 %v1825_v29 }
 0x3d6   :  { %v712_v63 = vadd.f32 %v1650_v62, %v1381_v26  ;;  %v703_v0 = vpop.f32.mrb[25].mxu1 }
 0x3d7   :  { %v704_v1 = vadd.f32 %v1381_v26, %v703_v0  ;;  %v1651_v2 = vpop.f32.mrb[26].mxu1  ;;  %1676 = vmatprep.mubr.bf16.mxu0 %v752_v61  ;;  %v1830_v0 = vld [vmem:[%s2146_s8 + $0x30] sm:$0xff]  }
 0x3d8   :  { %v715_v3 = vadd.f32 %v1651_v2, %v1381_v26  ;;  %v706_v4 = vpop.f32.mrb[27].mxu1  ;;  %1677 = vmatmul.mubr.bf16.gmra.mrb[36].mxu0 %v753_v60  ;;  %v744_v6 = vmax.f32 %v712_v63, 0.0  ;;  %v1390_v2 = vld [vmem:[%s2147_s7] ss:$0 sm:$0xff] }
 0x3d9   :  { %v707_v5 = vadd.f32 %v1381_v26, %v706_v4  ;;  %v742_v8 = vmax.f32 %v704_v1, 0.0  ;;  %v1831_v1 = vld [vmem:[%s2146_s8 + $0x38] sm:$0xff]  }
 0x3da   :  { %v745_v7 = vmax.f32 %v715_v3, 0.0 }
 0x3db   :  { %v743_v9 = vmax.f32 %v707_v5, 0.0 }
 0x3dc   :  { %v755_v10 = vpack.c.bf16 %v745_v7, %v744_v6 }
 0x3dd   :  { %v754_v11 = vpack.c.bf16 %v743_v9, %v742_v8  ;;  %v1654_v12 = vpop.f32.mrb[28].mxu1 }
 0x3de   :  { %v728_v13 = vadd.f32 %v1654_v12, %v1381_v26  ;;  %v719_v14 = vpop.f32.mrb[29].mxu1 }
 0x3df   :  { %v720_v15 = vadd.f32 %v1381_v26, %v719_v14  ;;  %v1655_v17 = vpop.f32.mrb[30].mxu1  ;;  %1680 = vmatprep.mubr.bf16.mxu0 %v754_v11 }
 0x3e0   :  { %v731_v18 = vadd.f32 %v1655_v17, %v1381_v26  ;;  %v722_v19 = vpop.f32.mrb[31].mxu1  ;;  %1681 = vmatmul.mubr.bf16.gmra.mrb[40].mxu0 %v755_v10  ;;  %v748_v21 = vmax.f32 %v728_v13, 0.0 }
 0x3e1   :  { %v723_v20 = vadd.f32 %v1381_v26, %v722_v19  ;;  %v746_v23 = vmax.f32 %v720_v15, 0.0  ;;  %v1826_v26 = vld [vmem:[%s2146_s8 + $0x10] sm:$0xff]  }
 0x3e2   :  { %v749_v22 = vmax.f32 %v731_v18, 0.0  ;;  %1724 = vmatprep.subr.bf16.mxu0 %v1826_v26 }
 0x3e3   :  { %v747_v24 = vmax.f32 %v723_v20, 0.0  ;;  %1725 = vmatpush3.bf16.msra.mxu0 %v1826_v26 }
 0x3e4   :  { %v757_v25 = vpack.c.bf16 %v749_v22, %v748_v21  ;;  %1726 = vmatprep.subr.bf16.mxu0 %v1827_v30 }
 0x3e5   :  { %v756_v27 = vpack.c.bf16 %v747_v24, %v746_v23 }
 0x3e7   :  { %1684 = vmatprep.mubr.bf16.mxu0 %v756_v27  ;;  %1727 = vmatpush3.bf16.msra.mxu0 %v1827_v30 }
 0x3e8   :  { %1685 = vmatmul.mubr.bf16.gmra.mrb[44].mxu0 %v757_v25  ;;  %1728 = vmatprep.subr.bf16.mxu0 %v1828_v31 }
 0x3eb   :  { %1729 = vmatpush3.bf16.msra.mxu0 %v1828_v31 }
 0x3ec   :  { %1730 = vmatprep.subr.bf16.mxu0 %v1829_v32 }
 0x3ef   :  { %1731 = vmatpush3.bf16.msra.mxu0 %v1829_v32 }
 0x3f0   :  { %1732 = vmatprep.subr.bf16.mxu0 %v1830_v0 }
 0x3f3   :  { %1733 = vmatpush3.bf16.msra.mxu0 %v1830_v0 }
 0x3f4   :  { %1734 = vmatprep.subr.bf16.mxu0 %v1831_v1 }
 0x3f7   :  { %1735 = vmatpush3.bf16.msra.mxu0 %v1831_v1 }
 0x4a3   :  { %v1674_v33 = vpop.f32.mrb[32].mxu0 }
 0x4a4   :  { %v856_v34 = vpop.f32.mrb[33].mxu0 }
 0x4a5   :  { %v1675_v35 = vpop.f32.mrb[34].mxu0 }
 0x4a6   :  { %v920_v36 = vpack.c.bf16 %v1675_v35, %v1674_v33  ;;  %v859_v37 = vpop.f32.mrb[35].mxu0 }
 0x4a7   :  { %v919_v38 = vpack.c.bf16 %v859_v37, %v856_v34 }
 0x4a9   :  { %1688 = vmatprep.subr.bf16.mxu1 %v919_v38 }
 0x4aa   :  { %1689 = vmatpush3.bf16.msra.mxu1 %v919_v38 }
 0x4ab   :  { %v1678_v39 = vpop.f32.mrb[36].mxu0  ;;  %1690 = vmatprep.subr.bf16.mxu1 %v920_v36 }
 0x4ac   :  { %v872_v40 = vpop.f32.mrb[37].mxu0 }
 0x4ad   :  { %v1679_v41 = vpop.f32.mrb[38].mxu0 }
 0x4ae   :  { %v922_v42 = vpack.c.bf16 %v1679_v41, %v1678_v39  ;;  %v875_v43 = vpop.f32.mrb[39].mxu0  ;;  %1691 = vmatpush3.bf16.msra.mxu1 %v920_v36 }
 0x4af   :  { %v921_v44 = vpack.c.bf16 %v875_v43, %v872_v40 }
 0x4b1   :  { %1692 = vmatprep.subr.bf16.mxu1 %v921_v44 }
 0x4b2   :  { %1693 = vmatpush3.bf16.msra.mxu1 %v921_v44 }
 0x4b3   :  { %v1682_v45 = vpop.f32.mrb[40].mxu0  ;;  %1694 = vmatprep.subr.bf16.mxu1 %v922_v42 }
 0x4b4   :  { %v888_v46 = vpop.f32.mrb[41].mxu0 }
 0x4b5   :  { %v1683_v54 = vpop.f32.mrb[42].mxu0 }
 0x4b6   :  { %v924_v55 = vpack.c.bf16 %v1683_v54, %v1682_v45  ;;  %v891_v57 = vpop.f32.mrb[43].mxu0  ;;  %1695 = vmatpush3.bf16.msra.mxu1 %v922_v42 }
 0x4b7   :  { %v923_v58 = vpack.c.bf16 %v891_v57, %v888_v46 }
 0x4b9   :  { %1696 = vmatprep.subr.bf16.mxu1 %v923_v58 }
 0x4ba   :  { %1697 = vmatpush3.bf16.msra.mxu1 %v923_v58 }
 0x4bb   :  { %v1686_v59 = vpop.f32.mrb[44].mxu0  ;;  %1698 = vmatprep.subr.bf16.mxu1 %v924_v55 }
 0x4bc   :  { %v904_v56 = vpop.f32.mrb[45].mxu0 }
 0x4bd   :  { %v1687_v60 = vpop.f32.mrb[46].mxu0 }
 0x4be   :  { %v926_v61 = vpack.c.bf16 %v1687_v60, %v1686_v59  ;;  %v907_v62 = vpop.f32.mrb[47].mxu0  ;;  %1699 = vmatpush3.bf16.msra.mxu1 %v924_v55 }
 0x4bf   :  { %v925_v63 = vpack.c.bf16 %v907_v62, %v904_v56 }
 0x4c1   :  { %1700 = vmatprep.subr.bf16.mxu1 %v925_v63 }
 0x4c2   :  { %1701 = vmatpush3.bf16.msra.mxu1 %v925_v63 }
 0x4c3   :  { %1702 = vmatprep.subr.bf16.mxu1 %v926_v61 }
 0x4c6   :  { %1703 = vmatpush3.bf16.msra.mxu1 %v926_v61 }
 0x4c9   :  { %1705 = vmatmul.mubr.bf16.vlgmr.msra.gmra.mrb[32].mxu1 %v1962_v47 }
 0x4ca   :  { %1708 = vmatprep.mubr.bf16.mxu1 %v1967_v48 }
 0x4d1   :  { %1709 = vmatmul.mubr.bf16.gmra.mrb[36].mxu1 %v1974_v49 }
 0x4d2   :  { %1712 = vmatprep.mubr.bf16.mxu1 %v1979_v50 }
 0x4d9   :  { %1713 = vmatmul.mubr.bf16.gmra.mrb[40].mxu1 %v1986_v51 }
 0x4da   :  { %1716 = vmatprep.mubr.bf16.mxu1 %v1991_v52 }
 0x4e1   :  { %1717 = vmatmul.mubr.bf16.gmra.mrb[44].mxu1 %v1998_v53 }
 0x4e2   :  { %1768 = vmatprep.mubr.bf16.mxu1 %v1938_v16 }
 0x59c   :  { %v1706_v3 = vpop.f32.mrb[32].mxu1 }
 0x59d   :  { %v977_v4 = vadd.f32 %v1706_v3, %v1390_v2  ;;  %v968_v5 = vpop.f32.mrb[33].mxu1 }
 0x59e   :  { %v969_v16 = vadd.f32 %v1390_v2, %v968_v5  ;;  %v1707_v6 = vpop.f32.mrb[34].mxu1 }
 0x59f   :  { %v980_v7 = vadd.f32 %v1707_v6, %v1390_v2  ;;  %v971_v8 = vpop.f32.mrb[35].mxu1  ;;  %v1033_v10 = vmax.f32 %v977_v4, 0.0 }
 0x5a0   :  { %v972_v9 = vadd.f32 %v1390_v2, %v971_v8  ;;  %v1031_v12 = vmax.f32 %v969_v16, 0.0 }
 0x5a1   :  { %v1034_v11 = vmax.f32 %v980_v7, 0.0 }
 0x5a2   :  { %v1032_v13 = vmax.f32 %v972_v9, 0.0 }
 0x5a3   :  { %v1048_v14 = vpack.c.bf16 %v1034_v11, %v1033_v10 }
 0x5a4   :  { %v1047_v15 = vpack.c.bf16 %v1032_v13, %v1031_v12  ;;  %v1710_v17 = vpop.f32.mrb[36].mxu1 }
 0x5a5   :  { %v993_v18 = vadd.f32 %v1710_v17, %v1390_v2  ;;  %v984_v19 = vpop.f32.mrb[37].mxu1 }
 0x5a6   :  { %v985_v20 = vadd.f32 %v1390_v2, %v984_v19  ;;  %v1711_v21 = vpop.f32.mrb[38].mxu1  ;;  %1736 = vmatprep.mubr.bf16.mxu0 %v1047_v15 }
 0x5a7   :  { %v996_v22 = vadd.f32 %v1711_v21, %v1390_v2  ;;  %v987_v23 = vpop.f32.mrb[39].mxu1  ;;  %1737 = vmatmul.mubr.bf16.vlgmr.msra.gmra.mrb[48].mxu0 %v1048_v14  ;;  %v1037_v25 = vmax.f32 %v993_v18, 0.0 }
 0x5a8   :  { %v988_v24 = vadd.f32 %v1390_v2, %v987_v23  ;;  %v1035_v28 = vmax.f32 %v985_v20, 0.0 }
 0x5a9   :  { %v1038_v27 = vmax.f32 %v996_v22, 0.0 }
 0x5aa   :  { %v1036_v29 = vmax.f32 %v988_v24, 0.0 }
 0x5ab   :  { %v1050_v26 = vpack.c.bf16 %v1038_v27, %v1037_v25  ;;  %v1399_v27 = vld [vmem:[%s2148_s9] ss:$0 sm:$0xff] }
 0x5ac   :  { %v1049_v30 = vpack.c.bf16 %v1036_v29, %v1035_v28  ;;  %v1714_v31 = vpop.f32.mrb[40].mxu1 }
 0x5ad   :  { %v1009_v32 = vadd.f32 %v1714_v31, %v1390_v2  ;;  %v1000_v33 = vpop.f32.mrb[41].mxu1 }
 0x5ae   :  { %v1001_v34 = vadd.f32 %v1390_v2, %v1000_v33  ;;  %v1715_v35 = vpop.f32.mrb[42].mxu1  ;;  %1740 = vmatprep.mubr.bf16.mxu0 %v1049_v30 }
 0x5af   :  { %v1012_v36 = vadd.f32 %v1715_v35, %v1390_v2  ;;  %v1003_v37 = vpop.f32.mrb[43].mxu1  ;;  %1741 = vmatmul.mubr.bf16.gmra.mrb[52].mxu0 %v1050_v26  ;;  %v1041_v39 = vmax.f32 %v1009_v32, 0.0 }
 0x5b0   :  { %v1004_v38 = vadd.f32 %v1390_v2, %v1003_v37  ;;  %v1039_v41 = vmax.f32 %v1001_v34, 0.0 }
 0x5b1   :  { %v1042_v40 = vmax.f32 %v1012_v36, 0.0 }
 0x5b2   :  { %v1040_v42 = vmax.f32 %v1004_v38, 0.0 }
 0x5b3   :  { %v1052_v43 = vpack.c.bf16 %v1042_v40, %v1041_v39 }
 0x5b4   :  { %v1051_v44 = vpack.c.bf16 %v1040_v42, %v1039_v41  ;;  %v1718_v45 = vpop.f32.mrb[44].mxu1 }
 0x5b5   :  { %v1025_v46 = vadd.f32 %v1718_v45, %v1390_v2  ;;  %v1016_v54 = vpop.f32.mrb[45].mxu1 }
 0x5b6   :  { %v1017_v55 = vadd.f32 %v1390_v2, %v1016_v54  ;;  %v1719_v57 = vpop.f32.mrb[46].mxu1  ;;  %1744 = vmatprep.mubr.bf16.mxu0 %v1051_v44 }
 0x5b7   :  { %v1028_v58 = vadd.f32 %v1719_v57, %v1390_v2  ;;  %v1019_v59 = vpop.f32.mrb[47].mxu1  ;;  %1745 = vmatmul.mubr.bf16.gmra.mrb[56].mxu0 %v1052_v43  ;;  %v1045_v60 = vmax.f32 %v1025_v46, 0.0 }
 0x5b8   :  { %v1020_v56 = vadd.f32 %v1390_v2, %v1019_v59  ;;  %v1043_v62 = vmax.f32 %v1017_v55, 0.0 }
 0x5b9   :  { %v1046_v61 = vmax.f32 %v1028_v58, 0.0 }
 0x5ba   :  { %v1044_v63 = vmax.f32 %v1020_v56, 0.0 }
 0x5bb   :  { %v1054_v0 = vpack.c.bf16 %v1046_v61, %v1045_v60 }
 0x5bc   :  { %v1053_v1 = vpack.c.bf16 %v1044_v63, %v1043_v62 }
 0x5be   :  { %1748 = vmatprep.mubr.bf16.mxu0 %v1053_v1 }
 0x5bf   :  { %1749 = vmatmul.mubr.bf16.gmra.mrb[60].mxu0 %v1054_v0 }
 0x67a   :  { %v1738_v3 = vpop.f32.mrb[48].mxu0 }
 0x67b   :  { %v1153_v4 = vpop.f32.mrb[49].mxu0 }
 0x67c   :  { %v1739_v5 = vpop.f32.mrb[50].mxu0 }
 0x67d   :  { %v1217_v16 = vpack.c.bf16 %v1739_v5, %v1738_v3  ;;  %v1156_v6 = vpop.f32.mrb[51].mxu0 }
 0x67e   :  { %v1216_v7 = vpack.c.bf16 %v1156_v6, %v1153_v4 }
 0x680   :  { %1752 = vmatprep.subr.bf16.mxu1 %v1216_v7 }
 0x681   :  { %1753 = vmatpush3.bf16.msra.mxu1 %v1216_v7 }
 0x682   :  { %v1742_v8 = vpop.f32.mrb[52].mxu0  ;;  %1754 = vmatprep.subr.bf16.mxu1 %v1217_v16 }
 0x683   :  { %v1169_v9 = vpop.f32.mrb[53].mxu0 }
 0x684   :  { %v1743_v2 = vpop.f32.mrb[54].mxu0 }
 0x685   :  { %v1219_v10 = vpack.c.bf16 %v1743_v2, %v1742_v8  ;;  %v1172_v11 = vpop.f32.mrb[55].mxu0  ;;  %1755 = vmatpush3.bf16.msra.mxu1 %v1217_v16 }
 0x686   :  { %v1218_v12 = vpack.c.bf16 %v1172_v11, %v1169_v9 }
 0x688   :  { %1756 = vmatprep.subr.bf16.mxu1 %v1218_v12 }
 0x689   :  { %1757 = vmatpush3.bf16.msra.mxu1 %v1218_v12 }
 0x68a   :  { %v1746_v13 = vpop.f32.mrb[56].mxu0  ;;  %1758 = vmatprep.subr.bf16.mxu1 %v1219_v10 }
 0x68b   :  { %v1185_v14 = vpop.f32.mrb[57].mxu0 }
 0x68c   :  { %v1747_v15 = vpop.f32.mrb[58].mxu0 }
 0x68d   :  { %v1221_v17 = vpack.c.bf16 %v1747_v15, %v1746_v13  ;;  %v1188_v18 = vpop.f32.mrb[59].mxu0  ;;  %1759 = vmatpush3.bf16.msra.mxu1 %v1219_v10 }
 0x68e   :  { %v1220_v19 = vpack.c.bf16 %v1188_v18, %v1185_v14 }
 0x690   :  { %1760 = vmatprep.subr.bf16.mxu1 %v1220_v19 }
 0x691   :  { %1761 = vmatpush3.bf16.msra.mxu1 %v1220_v19 }
 0x692   :  { %v1750_v20 = vpop.f32.mrb[60].mxu0  ;;  %1762 = vmatprep.subr.bf16.mxu1 %v1221_v17 }
 0x693   :  { %v1201_v21 = vpop.f32.mrb[61].mxu0 }
 0x694   :  { %v1751_v22 = vpop.f32.mrb[62].mxu0 }
 0x695   :  { %v1223_v23 = vpack.c.bf16 %v1751_v22, %v1750_v20  ;;  %v1204_v24 = vpop.f32.mrb[63].mxu0  ;;  %1763 = vmatpush3.bf16.msra.mxu1 %v1221_v17 }
 0x696   :  { %v1222_v25 = vpack.c.bf16 %v1204_v24, %v1201_v21 }
 0x698   :  { %1764 = vmatprep.subr.bf16.mxu1 %v1222_v25 }
 0x699   :  { %1765 = vmatpush3.bf16.msra.mxu1 %v1222_v25 }
 0x69a   :  { %1766 = vmatprep.subr.bf16.mxu1 %v1223_v23 }
 0x69d   :  { %1767 = vmatpush3.bf16.msra.mxu1 %v1223_v23 }
 0x6a0   :  { %1769 = vmatmul.mubr.bf16.vlgmr.msra.gmra.mrb[48].mxu1 %v1962_v47 }
 0x6a1   :  { %1772 = vmatprep.mubr.bf16.mxu1 %v1967_v48 }
 0x6a8   :  { %1773 = vmatmul.mubr.bf16.gmra.mrb[52].mxu1 %v1974_v49 }
 0x6a9   :  { %1776 = vmatprep.mubr.bf16.mxu1 %v1979_v50 }
 0x6b0   :  { %1777 = vmatmul.mubr.bf16.gmra.mrb[56].mxu1 %v1986_v51 }
 0x6b1   :  { %1780 = vmatprep.mubr.bf16.mxu1 %v1991_v52 }
 0x6b8   :  { %1781 = vmatmul.mubr.bf16.gmra.mrb[60].mxu1 %v1998_v53 }
 0x773   :  { %v1770_v28 = vpop.f32.mrb[48].mxu1 }
 0x774   :  { %v1274_v29 = vadd.f32 %v1770_v28, %v1399_v27  ;;  %v1265_v26 = vpop.f32.mrb[49].mxu1 }
 0x775   :  { %v1266_v47 = vadd.f32 %v1399_v27, %v1265_v26  ;;  %v1771_v30 = vpop.f32.mrb[50].mxu1 }
 0x776   :  { %1330 = vst [vmem:[%s2149_s10 + $0x10] sm:$0xff] %v1274_v29  ;;  %v1277_v48 = vadd.f32 %v1771_v30, %v1399_v27  ;;  %v1268_v49 = vpop.f32.mrb[51].mxu1 }
 0x777   :  { %1328 = vst [vmem:[%s2149_s10] sm:$0xff] %v1266_v47  ;;  %v1269_v50 = vadd.f32 %v1399_v27, %v1268_v49 }
 0x778   :  { %1331 = vst [vmem:[%s2149_s10 + $0x18] sm:$0xff] %v1277_v48 }
 0x779   :  { %1329 = vst [vmem:[%s2149_s10 + $0x8] sm:$0xff] %v1269_v50 }
 0x77b   :  { %v1774_v51 = vpop.f32.mrb[52].mxu1 }
 0x77c   :  { %v1290_v52 = vadd.f32 %v1774_v51, %v1399_v27  ;;  %v1281_v53 = vpop.f32.mrb[53].mxu1 }
 0x77d   :  { %v1282_v31 = vadd.f32 %v1399_v27, %v1281_v53  ;;  %v1775_v32 = vpop.f32.mrb[54].mxu1 }
 0x77e   :  { %1334 = vst [vmem:[%s2149_s10 + $0x30] sm:$0xff] %v1290_v52  ;;  %v1293_v33 = vadd.f32 %v1775_v32, %v1399_v27  ;;  %v1284_v34 = vpop.f32.mrb[55].mxu1 }
 0x77f   :  { %1332 = vst [vmem:[%s2149_s10 + $0x20] sm:$0xff] %v1282_v31  ;;  %v1285_v35 = vadd.f32 %v1399_v27, %v1284_v34 }
 0x780   :  { %1335 = vst [vmem:[%s2149_s10 + $0x38] sm:$0xff] %v1293_v33 }
 0x781   :  { %1333 = vst [vmem:[%s2149_s10 + $0x28] sm:$0xff] %v1285_v35 }
 0x783   :  { %v1778_v36 = vpop.f32.mrb[56].mxu1 }
 0x784   :  { %v1306_v37 = vadd.f32 %v1778_v36, %v1399_v27  ;;  %v1297_v38 = vpop.f32.mrb[57].mxu1 }
 0x785   :  { %v1298_v39 = vadd.f32 %v1399_v27, %v1297_v38  ;;  %v1779_v40 = vpop.f32.mrb[58].mxu1 }
 0x786   :  { %1338 = vst [vmem:[%s2149_s10 + $0x50] sm:$0xff] %v1306_v37  ;;  %v1309_v41 = vadd.f32 %v1779_v40, %v1399_v27  ;;  %v1300_v42 = vpop.f32.mrb[59].mxu1 }
 0x787   :  { %1336 = vst [vmem:[%s2149_s10 + $0x40] sm:$0xff] %v1298_v39  ;;  %v1301_v43 = vadd.f32 %v1399_v27, %v1300_v42 }
 0x788   :  { %1339 = vst [vmem:[%s2149_s10 + $0x58] sm:$0xff] %v1309_v41 }
 0x789   :  { %1337 = vst [vmem:[%s2149_s10 + $0x48] sm:$0xff] %v1301_v43 }
 0x78b   :  { %v1782_v44 = vpop.f32.mrb[60].mxu1 }
 0x78c   :  { %v1322_v45 = vadd.f32 %v1782_v44, %v1399_v27  ;;  %v1313_v46 = vpop.f32.mrb[61].mxu1 }
 0x78d   :  { %v1314_v54 = vadd.f32 %v1399_v27, %v1313_v46  ;;  %v1783_v55 = vpop.f32.mrb[62].mxu1 }
 0x78e   :  { %1342 = vst [vmem:[%s2149_s10 + $0x70] sm:$0xff] %v1322_v45  ;;  %v1325_v57 = vadd.f32 %v1783_v55, %v1399_v27  ;;  %v1316_v58 = vpop.f32.mrb[63].mxu1 }
 0x78f   :  { %1340 = vst [vmem:[%s2149_s10 + $0x60] sm:$0xff] %v1314_v54  ;;  %v1317_v59 = vadd.f32 %v1399_v27, %v1316_v58 }
 0x790   :  { %1343 = vst [vmem:[%s2149_s10 + $0x78] sm:$0xff] %v1325_v57 }
 0x791   :  { %1341 = vst [vmem:[%s2149_s10 + $0x68] sm:$0xff] %v1317_v59 }

</bundles_post_ra>
